<compile_context>
chip_gen: v7x
topology: tpu7x:2x2x1
jax: 0.10.0
libtpu: 0.0.40
codegen_flags: <defaults>
</compile_context>

<pallas_src>
import functools

import jax
import jax.numpy as jnp
from jax.experimental import pallas as pl
from jax.experimental.pallas import tpu as pltpu


def _awl_sum_kernel(num: int, losses_ref, out_ref):
    # losses_ref: (num,) f32 in SMEM.   out_ref: (1,) f32 in SMEM.
    # Unrolled scalar accumulation — runs entirely on the scalar unit.
    acc = losses_ref[0]
    for i in range(1, num):
        acc = acc + losses_ref[i]
    out_ref[0] = acc


def _awl_pallas_sum(losses_vec):
    """Sum a small 1-D f32 vector with a single grid-less Pallas call (SMEM only)."""
    num = losses_vec.shape[0]
    out = pl.pallas_call(
        functools.partial(_awl_sum_kernel, num),
        out_shape=jax.ShapeDtypeStruct((1,), jnp.float32),
        in_specs=[pl.BlockSpec(memory_space=pltpu.MemorySpace.SMEM)],
        out_specs=pl.BlockSpec(memory_space=pltpu.MemorySpace.SMEM),
        cost_estimate=pl.CostEstimate(
            flops=num, transcendentals=0, bytes_accessed=4 * (num + 1)
        ),
    )(losses_vec)
    return out[0]


@jax.custom_vjp
def _awl_forward(params, losses):
    # Forward pass of AutomaticWeightedLoss: plain sum of the loss terms.
    # `params` is intentionally unused, exactly like the reference forward().
    del params
    vec = jnp.stack([jnp.asarray(l, dtype=jnp.float32) for l in losses])
    return _awl_pallas_sum(vec)


def _awl_fwd(params, losses):
    return _awl_forward(params, losses), (params, losses)


def _awl_bwd(res, g):
    params, losses = res
    d_params = jnp.zeros_like(params)  # params never affect the output
    d_losses = tuple(
        jnp.broadcast_to(g, jnp.shape(l)).astype(jnp.result_type(l)) for l in losses
    )
    return d_params, d_losses


_awl_forward.defvjp(_awl_fwd, _awl_bwd)


def automatic_weighted_loss(params, *losses):
    """Forward pass of AutomaticWeightedLoss: returns sum(losses) as a scalar f32."""
    assert len(losses) > 0
    return _awl_forward(params, tuple(losses))


if __name__ == "__main__":
    num = 3
    # Deterministic parameter init, matching torch.ones(num) in __init__.
    params = jnp.ones((num,), dtype=jnp.float32)

    # Deterministic example "losses" (scalars), as the forward receives.
    key = jax.random.PRNGKey(0)
    keys = jax.random.split(key, num)
    losses = [jax.random.uniform(k, (), dtype=jnp.float32) for k in keys]

    result = automatic_weighted_loss(params, *losses)
    result = jax.block_until_ready(result)

    # Sanity check against the trivial reference (plain Python sum).
    ref = sum(float(l) for l in losses)
    assert abs(float(result) - ref) < 1e-5, (float(result), ref)

    # Differentiability check (custom_vjp): d/dparams = 0, d/dloss_i = 1.
    grads = jax.grad(automatic_weighted_loss, argnums=tuple(range(num + 1)))(
        params, *losses
    )
    assert float(jnp.max(jnp.abs(grads[0]))) == 0.0
    for gi in grads[1:]:
        assert abs(float(gi) - 1.0) < 1e-6

    print("KERNEL_OK")
</pallas_src>

<mosaic_0001>
module attributes {stable_mosaic.version = 11 : i64} {
  func.func @_awl_sum_kernel(%arg0: memref<3xf32, #tpu.memory_space<smem>>, %arg1: memref<1xf32, #tpu.memory_space<smem>>) attributes {dimension_semantics = [], scalar_prefetch = 0 : i64, scratch_operands = 0 : i64, tpu.core_type = #tpu.core_type<tc>} {
    %c0 = arith.constant 0 : index
    %0 = memref.load %arg0[%c0] : memref<3xf32, #tpu.memory_space<smem>>
    %c1 = arith.constant 1 : index
    %1 = memref.load %arg0[%c1] : memref<3xf32, #tpu.memory_space<smem>>
    %2 = arith.addf %0, %1 : f32
    %c2 = arith.constant 2 : index
    %3 = memref.load %arg0[%c2] : memref<3xf32, #tpu.memory_space<smem>>
    %4 = arith.addf %2, %3 : f32
    %c0_0 = arith.constant 0 : index
    %5 = memref.load %arg1[%c0_0] : memref<1xf32, #tpu.memory_space<smem>>
    memref.store %4, %arg1[%c0_0] : memref<1xf32, #tpu.memory_space<smem>>
    return
  }
}

</mosaic_0001>

<bundles_post_ra>
// kernel: tpu_custom_call.1
= control target key start
LH: loop header
LB: loop body
LE: loop exit
PB: predicated region body
PF: predicated region fallthrough
CT: control target
= control target key end

     0   :  { %6 = vsyncpa [#allocation3], 0  ;;  %s105_s0 = inlined_call_operand.hbm [shape: f32[3], index: 0, kind: input, shape index: {}]   ;;  %s106_s1 = inlined_call_operand.hbm [shape: f32[1], index: 1, kind: output, shape index: {}]  }
   0x1   :  { %7 = vsyncpa [#allocation4], 0  ;;  %s45_s8 = scalar_lea.hbm %s105_s0, 16 }
   0x2   :  { %p46_p0 = scmp.ne.s32.totalorder %s105_s0, %s45_s8  ;;  %p49_p1 = scmp.lt.u32.totalorder %s45_s8, %s105_s0 }
   0x4   :  { %p51_p2 = pnand %p49_p1, %p46_p0 }
   0x6   :  { %54 = shalt.err (!%p51_p2)
}
   0x7   :  { %s69_s13 = smov [#allocation2]  }
   0x8   :  { %15 = dma.hbm_to_smem %s105_s0, 16, %s69_s13, [#allocation3]  }
   0x9   :  { %65 = dma.done.wait [#allocation3], 16  }
   0xa   :  { %66 = vsyncadd [#allocation3], 4294967280 }
   0xb   :  { %19 = sfence }
   0xc   :  { %s20_s16 = sld [smem:[#allocation2]]  ;;  %s41_s17 = sld [smem:[#allocation2 + $0x1]] }
   0xd   :  { %s42_s18 = sld [smem:[#allocation2 + $0x2]]  ;;  %s55_s23 = scalar_lea.hbm %s106_s1, 16 }
   0xe   :  { %p56_p3 = scmp.ne.s32.totalorder %s106_s1, %s55_s23  ;;  %p59_p4 = scmp.lt.u32.totalorder %s55_s23, %s106_s1 }
  0x10   :  { %p61_p5 = pnand %p59_p4, %p56_p3 }
  0x12   :  { %s22_s19 = sadd.f32 %s41_s17, %s20_s16 }
  0x14   :  { %s24_s20 = sadd.f32 %s42_s18, %s22_s19 }
  0x16   :  { %26 = sst [smem:[#allocation5]] %s24_s20 }
  0x17   :  { %64 = shalt.err (!%p61_p5)
}
  0x18   :  { %s70_s0 = smov [#allocation5]  }
  0x19   :  { %34 = dma.smem_to_hbm %s70_s0, 16, %s106_s1, [#allocation4]  }
  0x1a   :  { %67 = dma.done.wait [#allocation4], 16  }
  0x1b   :  { %68 = vsyncadd [#allocation4], 4294967280 }
  0x1c   :  { %38 = sfence }
  0x1d   :  { %39 = vsyncpa [#allocation3], 1 }
  0x1e   :  { %40 = vsyncpa [#allocation4], 1 }

</bundles_post_ra>
